<compile_context>
chip_gen: v6e
topology: v6e:2x2x1
jax: 0.10.0
libtpu: 0.0.40
codegen_flags: <defaults>
</compile_context>

<pallas_src>
import functools

import jax
import jax.numpy as jnp
from jax.experimental import pallas as pl
from jax.experimental.pallas import tpu as pltpu

B_PAD = 8     # sublane tile
F_PAD = 128   # lane tile


def _mycell_seq_kernel(xs_ref, wt_ref, b_ref, h0_ref, hs_ref, h_scr, *, k_dim):
    """One grid step == one MyCell step.  h is carried in VMEM scratch."""
    t = pl.program_id(0)

    @pl.when(t == 0)
    def _():
        h_scr[...] = h0_ref[...]

    x = xs_ref[0]          # (8, 128): batch on sublanes, IN features on lanes 0..3
    wt = wt_ref[...]       # (8, 128): IN on sublanes (rows 0..3), OUT on lanes 0..3
    y = b_ref[...]         # (8, 128): bias tile, zero outside the valid (B, OUT) region

    # Linear: y = x @ W^T + b as k_dim (=4) VPU broadcast-FMAs (static unroll).
    for k in range(k_dim):
        y = y + x[:, k:k + 1] * wt[k:k + 1, :]

    # MyDecisionGate: y if y.sum() > 0 else -y.  Padded elements of y are
    # exactly zero, so the full-tile sum equals the sum over the real region.
    sign = jnp.where(jnp.sum(y) > 0.0, jnp.float32(1.0), jnp.float32(-1.0))

    new_h = jnp.tanh(y * sign + h_scr[...])
    h_scr[...] = new_h                           # carry for next step (VMEM only)
    hs_ref[...] = new_h.astype(hs_ref.dtype)     # lane-dense 128-wide block for step t


@jax.jit
def mycell_unrolled(xs, h0, w, b):
    """Run MyCell over T steps in one fused pallas_call.

    xs: (T, B, IN)   h0: (B, OUT)   w: (OUT, IN) PyTorch Linear layout   b: (OUT,)
    Returns hs: (T, B, OUT), the hidden state after every step.
    """
    T, B, IN = xs.shape
    OUT = w.shape[0]
    f32 = jnp.float32

    # --- free layout plumbing (tiny, one-time, outside the grid loop) ---
    xs_pad = jnp.zeros((T, B_PAD, F_PAD), f32).at[:, :B, :IN].set(xs.astype(f32))
    # Weight laid out once as (IN on sublanes, OUT on lanes) so each k-slice of
    # the VPU contraction is a contiguous lane row; resident in VMEM for all T.
    wt_pad = jnp.zeros((B_PAD, F_PAD), f32).at[:IN, :OUT].set(w.astype(f32).T)
    # Bias tile that is zero on padded rows/cols -> padded linear outputs are 0.
    b_pad = jnp.zeros((B_PAD, F_PAD), f32).at[:B, :OUT].set(
        jnp.broadcast_to(b.astype(f32), (B, OUT)))
    h0_pad = jnp.zeros((B_PAD, F_PAD), f32).at[:B, :OUT].set(h0.astype(f32))

    kernel = functools.partial(_mycell_seq_kernel, k_dim=IN)

    hs_slab = pl.pallas_call(
        kernel,
        out_shape=jax.ShapeDtypeStruct((B_PAD, T * F_PAD), f32),
        grid_spec=pltpu.PrefetchScalarGridSpec(
            num_scalar_prefetch=0,
            grid=(T,),
            in_specs=[
                pl.BlockSpec((1, B_PAD, F_PAD), lambda t: (t, 0, 0)),   # x_t
                pl.BlockSpec((B_PAD, F_PAD), lambda t: (0, 0)),         # W^T (resident)
                pl.BlockSpec((B_PAD, F_PAD), lambda t: (0, 0)),         # bias (resident)
                pl.BlockSpec((B_PAD, F_PAD), lambda t: (0, 0)),         # h0  (resident)
            ],
            out_specs=pl.BlockSpec((B_PAD, F_PAD), lambda t: (0, t)),   # lane-dense slab
            scratch_shapes=[pltpu.VMEM((B_PAD, F_PAD), f32)],           # h carry
        ),
        compiler_params=pltpu.CompilerParams(
            dimension_semantics=("arbitrary",)),    # sequential carry over t
    )(xs_pad, wt_pad, b_pad, h0_pad)

    hs = hs_slab.reshape(B_PAD, T, F_PAD).transpose(1, 0, 2)[:, :B, :OUT]
    return hs


@jax.jit
def mycell_forward(x, h, w, b):
    """Single MyCell step, same semantics as the PyTorch module: (new_h, new_h)."""
    new_h = mycell_unrolled(x[None], h, w, b)[0]
    return new_h, new_h


if __name__ == "__main__":
    key = jax.random.PRNGKey(0)
    kx, kh, kw, kb, ks = jax.random.split(key, 5)

    B, IN, OUT = 3, 4, 4
    T = 8

    # Inputs (analogous to torch.rand(3, 4))
    x = jax.random.uniform(kx, (B, IN), dtype=jnp.float32)
    h = jax.random.uniform(kh, (B, OUT), dtype=jnp.float32)

    # Deterministic Linear(4, 4) params, PyTorch-style uniform(-1/sqrt(in), 1/sqrt(in))
    bound = 1.0 / jnp.sqrt(jnp.float32(IN))
    w = jax.random.uniform(kw, (OUT, IN), minval=-bound, maxval=bound, dtype=jnp.float32)
    b = jax.random.uniform(kb, (OUT,), minval=-bound, maxval=bound, dtype=jnp.float32)

    def ref_step(x_, h_, w_, b_):
        y = x_ @ w_.T + b_
        gated = jnp.where(jnp.sum(y) > 0, y, -y)
        return jnp.tanh(gated + h_)

    # 1) Single-step: exact module semantics.
    new_h, new_h_dup = mycell_forward(x, h, w, b)
    jax.block_until_ready(new_h)
    ref = ref_step(x, h, w, b)
    assert jnp.allclose(new_h, ref, atol=1e-5), "single-step mismatch vs reference"
    assert jnp.allclose(new_h, new_h_dup), "tuple outputs must carry the same value"

    # 2) Fused T-step recurrence: one pallas_call, resident weights, VMEM h carry.
    xs = jax.random.uniform(ks, (T, B, IN), dtype=jnp.float32)
    hs = mycell_unrolled(xs, h, w, b)
    jax.block_until_ready(hs)

    h_ref = h
    for t in range(T):
        h_ref = ref_step(xs[t], h_ref, w, b)
        assert jnp.allclose(hs[t], h_ref, atol=1e-5), f"fused step {t} mismatch"

    print("KERNEL_OK")
</pallas_src>

<mosaic_0001>
module attributes {stable_mosaic.version = 11 : i64} {
  func.func @_mycell_seq_kernel(%arg0: i32, %arg1: memref<1x8x128xf32, #tpu.memory_space<vmem>>, %arg2: memref<8x128xf32, #tpu.memory_space<vmem>>, %arg3: memref<8x128xf32, #tpu.memory_space<vmem>>, %arg4: memref<8x128xf32, #tpu.memory_space<vmem>>, %arg5: memref<8x128xf32, #tpu.memory_space<vmem>>, %arg6: memref<8x128xf32, #tpu.memory_space<vmem>>) attributes {dimension_semantics = [#tpu.dimension_semantics<arbitrary>], iteration_bounds = array<i64: 1>, scalar_prefetch = 0 : i64, scratch_operands = 1 : i64, tpu.core_type = #tpu.core_type<tc>, window_params = [{transform_indices = @transform_0, window_bounds = array<i64: 1, 8, 128>}, {pipeline_mode = #tpu.pipeline_mode<synchronous>, transform_indices = @transform_1, window_bounds = array<i64: 8, 128>}, {pipeline_mode = #tpu.pipeline_mode<synchronous>, transform_indices = @transform_2, window_bounds = array<i64: 8, 128>}, {pipeline_mode = #tpu.pipeline_mode<synchronous>, transform_indices = @transform_3, window_bounds = array<i64: 8, 128>}, {transform_indices = @transform_4, window_bounds = array<i64: 8, 128>}]} {
    %c0_i32 = arith.constant 0 : i32
    %0 = arith.cmpi eq, %arg0, %c0_i32 : i32
    %1 = arith.extui %0 : i1 to i32
    %c0_i32_0 = arith.constant 0 : i32
    %2 = arith.cmpi ne, %1, %c0_i32_0 : i32
    scf.if %2 {
      %c0_16 = arith.constant 0 : index
      %c0_17 = arith.constant 0 : index
      %44 = vector.load %arg4[%c0_16, %c0_17] : memref<8x128xf32, #tpu.memory_space<vmem>>, vector<8x128xf32>
      %c0_18 = arith.constant 0 : index
      %c0_19 = arith.constant 0 : index
      %45 = vector.load %arg6[%c0_18, %c0_19] : memref<8x128xf32, #tpu.memory_space<vmem>>, vector<8x128xf32>
      tpu.vector_store %arg6[%c0_18, %c0_19], %44 {strides = array<i32>} : memref<8x128xf32, #tpu.memory_space<vmem>>, vector<8x128xf32>,
    } else {
    }
    %c0 = arith.constant 0 : index
    %c0_1 = arith.constant 0 : index
    %c0_2 = arith.constant 0 : index
    %3 = vector.load %arg1[%c0, %c0_1, %c0_2] : memref<1x8x128xf32, #tpu.memory_space<vmem>>, vector<1x8x128xf32>
    %4 = vector.shape_cast %3 : vector<1x8x128xf32> to vector<8x128xf32>
    %c0_3 = arith.constant 0 : index
    %c0_4 = arith.constant 0 : index
    %5 = vector.load %arg2[%c0_3, %c0_4] : memref<8x128xf32, #tpu.memory_space<vmem>>, vector<8x128xf32>
    %c0_5 = arith.constant 0 : index
    %c0_6 = arith.constant 0 : index
    %6 = vector.load %arg3[%c0_5, %c0_6] : memref<8x128xf32, #tpu.memory_space<vmem>>, vector<8x128xf32>
    %7 = vector.extract_strided_slice %4 {offsets = [0, 0], sizes = [8, 1], strides = [1, 1]} : vector<8x128xf32> to vector<8x1xf32>
    %8 = vector.extract_strided_slice %5 {offsets = [0, 0], sizes = [1, 128], strides = [1, 1]} : vector<8x128xf32> to vector<1x128xf32>
    %9 = vector.broadcast %7 : vector<8x1xf32> to vector<8x128xf32>
    %10 = vector.broadcast %8 : vector<1x128xf32> to vector<8x128xf32>
    %11 = arith.mulf %9, %10 : vector<8x128xf32>
    %12 = arith.addf %6, %11 : vector<8x128xf32>
    %13 = vector.extract_strided_slice %4 {offsets = [0, 1], sizes = [8, 1], strides = [1, 1]} : vector<8x128xf32> to vector<8x1xf32>
    %14 = vector.extract_strided_slice %5 {offsets = [1, 0], sizes = [1, 128], strides = [1, 1]} : vector<8x128xf32> to vector<1x128xf32>
    %15 = vector.broadcast %13 : vector<8x1xf32> to vector<8x128xf32>
    %16 = vector.broadcast %14 : vector<1x128xf32> to vector<8x128xf32>
    %17 = arith.mulf %15, %16 : vector<8x128xf32>
    %18 = arith.addf %12, %17 : vector<8x128xf32>
    %19 = vector.extract_strided_slice %4 {offsets = [0, 2], sizes = [8, 1], strides = [1, 1]} : vector<8x128xf32> to vector<8x1xf32>
    %20 = vector.extract_strided_slice %5 {offsets = [2, 0], sizes = [1, 128], strides = [1, 1]} : vector<8x128xf32> to vector<1x128xf32>
    %21 = vector.broadcast %19 : vector<8x1xf32> to vector<8x128xf32>
    %22 = vector.broadcast %20 : vector<1x128xf32> to vector<8x128xf32>
    %23 = arith.mulf %21, %22 : vector<8x128xf32>
    %24 = arith.addf %18, %23 : vector<8x128xf32>
    %25 = vector.extract_strided_slice %4 {offsets = [0, 3], sizes = [8, 1], strides = [1, 1]} : vector<8x128xf32> to vector<8x1xf32>
    %26 = vector.extract_strided_slice %5 {offsets = [3, 0], sizes = [1, 128], strides = [1, 1]} : vector<8x128xf32> to vector<1x128xf32>
    %27 = vector.broadcast %25 : vector<8x1xf32> to vector<8x128xf32>
    %28 = vector.broadcast %26 : vector<1x128xf32> to vector<8x128xf32>
    %29 = arith.mulf %27, %28 : vector<8x128xf32>
    %30 = arith.addf %24, %29 : vector<8x128xf32>
    %31 = vector.shape_cast %30 : vector<8x128xf32> to vector<1x8x128xf32>
    %cst = arith.constant dense<0.000000e+00> : vector<1xf32>
    %32 = vector.multi_reduction <add>, %31, %cst [1, 2] : vector<1x8x128xf32> to vector<1xf32>
    %33 = vector.shape_cast %32 : vector<1xf32> to vector<1x1x1xf32>
    %34 = vector.extract %33[0, 0, 0] : f32 from vector<1x1x1xf32>
    %cst_7 = arith.constant 0.000000e+00 : f32
    %35 = arith.cmpf ogt, %34, %cst_7 : f32
    %cst_8 = arith.constant 1.000000e+00 : f32
    %cst_9 = arith.constant -1.000000e+00 : f32
    %36 = arith.select %35, %cst_8, %cst_9 : f32
    %37 = vector.broadcast %36 : f32 to vector<8x128xf32>
    %38 = arith.mulf %30, %37 : vector<8x128xf32>
    %c0_10 = arith.constant 0 : index
    %c0_11 = arith.constant 0 : index
    %39 = vector.load %arg6[%c0_10, %c0_11] : memref<8x128xf32, #tpu.memory_space<vmem>>, vector<8x128xf32>
    %40 = arith.addf %38, %39 : vector<8x128xf32>
    %41 = math.tanh %40 : vector<8x128xf32>
    %c0_12 = arith.constant 0 : index
    %c0_13 = arith.constant 0 : index
    %42 = vector.load %arg6[%c0_12, %c0_13] : memref<8x128xf32, #tpu.memory_space<vmem>>, vector<8x128xf32>
    tpu.vector_store %arg6[%c0_12, %c0_13], %41 {strides = array<i32>} : memref<8x128xf32, #tpu.memory_space<vmem>>, vector<8x128xf32>,
    %c0_14 = arith.constant 0 : index
    %c0_15 = arith.constant 0 : index
    %43 = vector.load %arg5[%c0_14, %c0_15] : memref<8x128xf32, #tpu.memory_space<vmem>>, vector<8x128xf32>
    tpu.vector_store %arg5[%c0_14, %c0_15], %41 {strides = array<i32>} : memref<8x128xf32, #tpu.memory_space<vmem>>, vector<8x128xf32>,
    return
  }
  func.func @transform_0(%arg0: i32) -> (i32, i32, i32) {
    %c0_i32 = arith.constant 0 : i32
    %c0_i32_0 = arith.constant 0 : i32
    %c0_i32_1 = arith.constant 0 : i32
    return %arg0, %c0_i32, %c0_i32_0 : i32, i32, i32
  }
  func.func @transform_1(%arg0: i32) -> (i32, i32) {
    %c0_i32 = arith.constant 0 : i32
    %c0_i32_0 = arith.constant 0 : i32
    %c0_i32_1 = arith.constant 0 : i32
    return %c0_i32, %c0_i32_0 : i32, i32
  }
  func.func @transform_2(%arg0: i32) -> (i32, i32) {
    %c0_i32 = arith.constant 0 : i32
    %c0_i32_0 = arith.constant 0 : i32
    %c0_i32_1 = arith.constant 0 : i32
    return %c0_i32, %c0_i32_0 : i32, i32
  }
  func.func @transform_3(%arg0: i32) -> (i32, i32) {
    %c0_i32 = arith.constant 0 : i32
    %c0_i32_0 = arith.constant 0 : i32
    %c0_i32_1 = arith.constant 0 : i32
    return %c0_i32, %c0_i32_0 : i32, i32
  }
  func.func @transform_4(%arg0: i32) -> (i32, i32) {
    %c0_i32 = arith.constant 0 : i32
    %c0_i32_0 = arith.constant 0 : i32
    return %c0_i32, %arg0 : i32, i32
  }
}

</mosaic_0001>

<bundles_post_ra>
// kernel: mycell_unrolled.1
= control target key start
LH: loop header
LB: loop body
LE: loop exit
PB: predicated region body
PF: predicated region fallthrough
CT: control target
= control target key end

     0   :  { %v102_v0 = vmov 0   ;;  %v103_v2 = vmov 2   ;;  %v104_v3 = vmov 1   ;;  %v105_v4 = vmov 3   ;;  %s146_s0 = inlined_call_operand.vmem [shape: f32[1,8,128], index: 0, kind: input, shape index: {}]   ;;  %s147_s1 = inlined_call_operand.vmem [shape: f32[8,128], index: 1, kind: input, shape index: {}]   ;;  %s148_s2 = inlined_call_operand.vmem [shape: f32[8,128], index: 2, kind: input, shape index: {}]   ;;  %s149_s3 = inlined_call_operand.vmem [shape: f32[8,128], index: 3, kind: input, shape index: {}]   ;;  %s150_s4 = inlined_call_operand.vmem [shape: f32[8,128], index: 4, kind: output, shape index: {}]  }
   0x1   :  { %95 = vset.pattern.permute.xlu0 %v102_v0  ;;  %v23_v1 = vld [vmem:[%s146_s0] sm:$0xff]  ;;  %97 = vset.pattern.permute.xlu1 %v103_v2  ;;  %v31_v5 = vlaneseq }
   0x2   :  { %28 = vperm.xlu0 %95, %v23_v1   ;;  %48 = vperm.xlu1 %97, %v23_v1   ;;  %v24_v8 = vld [vmem:[%s147_s1] sm:$0xff] }
   0x3   :  { %v32_v6 = vshrl.u32 %v31_v5, 7  ;;  %v25_v17 = vld [vmem:[%s148_s2] sm:$0xff] }
   0x4   :  { %v21_v36 = vld [vmem:[%s149_s3] sm:$0xff] }
   0x5   :  { %v33_v7 = vsub.s32 0, %v32_v6  ;;  %v43_v10 = vsub.s32 1, %v32_v6  ;;  %v53_v12 = vsub.s32 2, %v32_v6  ;;  %v63_v14 = vsub.s32 3, %v32_v6 }
   0x6   :  { %96 = vset.pattern.permute.xlu0 %v104_v3  ;;  %98 = vset.pattern.permute.xlu1 %v105_v4 }
   0x7   :  { %38 = vperm.xlu0 %96, %v23_v1   ;;  %58 = vperm.xlu1 %98, %v23_v1   ;;  %v34_v9 = vrot.slane %v24_v8, %v33_v7  ;;  %v44_v16 = vrot.slane %v24_v8, %v43_v10  ;;  %v54_v18 = vrot.slane %v24_v8, %v53_v12 }
   0x8   :  { %v64_v19 = vrot.slane %v24_v8, %v63_v14 }
   0xb   :  { %99 = vset.pattern.permute.xlu0 %v105_v4 }
  0x7d   :  { %v29_v11 = vpop.permute.xlu0 %28  ;;  %v49_v13 = vpop.permute.xlu1 %48 }
  0x7e   :  { %v35_v15 = vmul.f32 %v34_v9, %v29_v11  ;;  %v55_v24 = vmul.f32 %v54_v18, %v49_v13 }
  0x80   :  { %v36_v22 = vadd.f32 %v35_v15, %v25_v17 }
  0x82   :  { %v39_v20 = vpop.permute.xlu0 %38  ;;  %v59_v21 = vpop.permute.xlu1 %58 }
  0x83   :  { %v45_v23 = vmul.f32 %v44_v16, %v39_v20  ;;  %v65_v26 = vmul.f32 %v64_v19, %v59_v21 }
  0x85   :  { %v46_v25 = vadd.f32 %v45_v23, %v36_v22 }
  0x87   :  { %v56_v27 = vadd.f32 %v55_v24, %v46_v25 }
  0x89   :  { %v66_v28 = vadd.f32 %v65_v26, %v56_v27 }
  0x8b   :  { %67 = vadd.xlane.f32.xlu1 %v66_v28 }
 0x114   :  { %v68_v29 = vpop.xlane.xlu1 %67 }
 0x115   :  { %v69_v30 = vrot.slane %v68_v29, 4 }
 0x117   :  { %v70_v31 = vadd.f32 %v69_v30, %v68_v29 }
 0x119   :  { %v71_v32 = vrot.slane %v70_v31, 2 }
 0x11b   :  { %v72_v33 = vadd.f32 %v71_v32, %v70_v31 }
 0x11d   :  { %v73_v34 = vrot.slane %v72_v33, 1 }
 0x11f   :  { %v74_v35 = vadd.f32 %v73_v34, %v72_v33 }
 0x121   :  { %89 = vpush %v74_v35 }
 0x152   :  { %s90_s1 = spop %89 }
 0x153   :  { %p76_p0 = scmp.gt.f32.partialorder %s90_s1, 0.0 }
 0x155   :  { %s77_s2 = scalar_select %p76_p0, 1.0, -1.0 }
 0x157   :  { %v78_v37 = vstv %s77_s2 }
 0x158   :  { %v79_v38 = vmul.f32 %v78_v37, %v66_v28 }
 0x15a   :  { %v81_v39 = vadd.f32 %v79_v38, %v21_v36 }
 0x15c   :  { %100 = vtanh.f32 %v81_v39 }
 0x169   :  { %v101_v40 = vpop.eup %100 }
 0x16a   :  { %84 = vst [vmem:[%s150_s4] sm:$0xff] %v101_v40 }

</bundles_post_ra>
